<compile_context>
chip_gen: v6e
topology: v6e:2x2x1
jax: 0.10.0
libtpu: 0.0.40
codegen_flags: <defaults>
</compile_context>

<pallas_src>
import functools
import numpy as np
import jax
import jax.numpy as jnp
from jax.experimental import pallas as pl
from jax.experimental.pallas import tpu as pltpu


def _voxel_key_kernel(pts_ref, key_ref, *, range_min, voxel_size, grid_size,
                      max_batch, sentinel):
    # pts_ref: (4, TS, 128) f32 channel planes: row 0 = batch (-1.0 => padding),
    #          rows 1..3 = x, y, z.
    # key_ref: (TS, 128) i32 flattened voxel key; == sentinel when invalid.
    b = pts_ref[0].astype(jnp.int32)
    x = pts_ref[1]
    y = pts_ref[2]
    z = pts_ref[3]

    Dx, Dy, Dz = grid_size
    vx = jnp.floor((x - range_min[0]) / voxel_size[0]).astype(jnp.int32)
    vy = jnp.floor((y - range_min[1]) / voxel_size[1]).astype(jnp.int32)
    vz = jnp.floor((z - range_min[2]) / voxel_size[2]).astype(jnp.int32)

    valid = ((b >= 0) & (b < max_batch)
             & (vx >= 0) & (vx < Dx)
             & (vy >= 0) & (vy < Dy)
             & (vz >= 0) & (vz < Dz))

    # Horner form of the flattened (b, z, y, x) key; garbage on invalid lanes
    # is masked by the select below (overflow impossible for valid lanes, see
    # the max_key check in the wrapper).
    key = ((b * Dz + vz) * Dy + vy) * Dx + vx
    key_ref[...] = jnp.where(valid, key, jnp.int32(sentinel))


def voxelize(points, *, point_cloud_range, voxel_size,
             max_points_per_voxel=5, max_total_voxels=512,
             use_lead_xyz=True, max_batch_size=16, tile_sublanes=1024):
    """points: (N, 1+C) f32, col 0 = batch idx, cols 1:4 = xyz, rest = extra feats.

    Returns dict with statically-shaped, zero-padded outputs:
      voxels           (max_total_voxels, max_points_per_voxel, C [-3 if not lead_xyz])
      voxel_coords     (max_total_voxels, 4)  as (b, z, y, x)
      voxel_num_points (max_total_voxels,)
      num_voxels       scalar int32 (number of valid rows)
    """
    N, C1 = points.shape
    C = C1 - 1

    pc_range = np.asarray(point_cloud_range, np.float32)
    vsz = np.asarray(voxel_size, np.float32)
    grid_dims = np.round((pc_range[3:6] - pc_range[0:3]) / vsz).astype(np.int64)
    Dx, Dy, Dz = int(grid_dims[0]), int(grid_dims[1]), int(grid_dims[2])

    sentinel = np.int32(2**31 - 1)
    max_key = int(max_batch_size) * Dx * Dy * Dz - 1
    if max_key >= int(sentinel):
        raise ValueError(
            f"flattened voxel key overflows int32 (max_key={max_key}); "
            "reduce max_batch_size or voxel grid size")

    # --- tiling: each grid step processes TS * 128 points --------------------
    nb_min = -(-N // 128)                                   # cdiv(N, 128)
    TS = int(max(8, min(int(tile_sublanes), ((nb_min + 7) // 8) * 8)))
    TS = ((TS + 7) // 8) * 8                                # multiple of 8 sublanes
    NB = ((nb_min + TS - 1) // TS) * TS                     # blocks of 128 points
    N_pad = NB * 128

    # Channel-plane input (4, NB, 128): rows = (batch, x, y, z); padding rows
    # get batch = -1.0 so the kernel marks them invalid. Single fused
    # pad+transpose+reshape, no column reorder.
    p4 = jnp.pad(points[:, :4].astype(jnp.float32),
                 ((0, N_pad - N), (0, 0)), constant_values=-1.0)
    pts_t = p4.T.reshape(4, NB, 128)

    kernel = functools.partial(
        _voxel_key_kernel,
        range_min=tuple(float(v) for v in pc_range[:3]),
        voxel_size=tuple(float(v) for v in vsz),
        grid_size=(Dx, Dy, Dz),
        max_batch=int(max_batch_size),
        sentinel=int(sentinel))

    in_bytes = 4 * TS * 128 * 4          # one (4, TS, 128) f32 buffer
    out_bytes = TS * 128 * 4             # one (TS, 128) i32 buffer
    vmem_limit = int(min(64 << 20,
                         max(32 << 20, 2 * (in_bytes + out_bytes) + (4 << 20))))

    key_planes = pl.pallas_call(
        kernel,
        grid=(NB // TS,),
        in_specs=[pl.BlockSpec((4, TS, 128), lambda i: (0, i, 0))],
        out_specs=pl.BlockSpec((TS, 128), lambda i: (i, 0)),
        out_shape=jax.ShapeDtypeStruct((NB, 128), jnp.int32),
        compiler_params=pltpu.CompilerParams(
            dimension_semantics=("parallel",),
            vmem_limit_bytes=vmem_limit),
    )(pts_t)

    keys = key_planes.reshape(N_pad)[:N]                    # per-point key, point order

    # ---- dynamic-shape voxel assembly (plain JAX glue, static cap) ----------
    feats = points[:, 1:].astype(jnp.float32)               # (N, C): xyz + extras

    order = jnp.argsort(keys, stable=True)                  # stable: keeps per-voxel point order
    keys_s = keys[order]

    valid = keys_s != sentinel
    new_seg = jnp.concatenate(
        [jnp.array([True]), keys_s[1:] != keys_s[:-1]]) & valid
    voxel_id = jnp.cumsum(new_seg.astype(jnp.int32)) - 1

    idx = jnp.arange(N, dtype=jnp.int32)
    seg_start = jax.lax.cummax(jnp.where(new_seg, idx, -1))
    rank = idx - seg_start

    MAXV = int(max_total_voxels)
    MAXP = int(max_points_per_voxel)
    # TODO(synk): spconv caps max_voxels per frame and keeps first-encountered
    # voxels; here the cap is global and kept voxels are lowest-key per batch.
    keep = valid & (rank < MAXP) & (voxel_id < MAXV)

    # Features: one i32 scatter of slots back to original point order (inverse
    # permutation) + one feature scatter, instead of gathering feats[order].
    slot = jnp.where(keep, voxel_id * MAXP + rank, MAXV * MAXP).astype(jnp.int32)
    slot_orig = jnp.zeros((N,), jnp.int32).at[order].set(slot)
    voxels = (jnp.zeros(((MAXV + 1) * MAXP, C), jnp.float32)
              .at[slot_orig].set(feats)
              .reshape(MAXV + 1, MAXP, C)[:MAXV])

    vid = jnp.where(keep, voxel_id, MAXV)
    voxel_num_points = (jnp.zeros((MAXV + 1,), jnp.int32)
                        .at[vid].add(keep.astype(jnp.int32))[:MAXV])

    # Coords: scatter only the per-voxel head key, then decode (b, z, y, x) for
    # the <= MAXV kept rows (no per-point coordinate output from the kernel).
    vid_first = jnp.where(new_seg & (voxel_id < MAXV), voxel_id, MAXV)
    head_keys = (jnp.zeros((MAXV + 1,), jnp.int32)
                 .at[vid_first].set(keys_s)[:MAXV])
    kx = head_keys % Dx
    t = head_keys // Dx
    ky = t % Dy
    t = t // Dy
    kz = t % Dz
    kb = t // Dz
    voxel_coords = jnp.stack([kb, kz, ky, kx], axis=1).astype(jnp.int32)

    num_voxels = jnp.minimum(jnp.sum(new_seg.astype(jnp.int32)), MAXV)

    if not use_lead_xyz:
        voxels = voxels[..., 3:]

    return {
        "voxels": voxels,
        "voxel_coords": voxel_coords,
        "voxel_num_points": voxel_num_points,
        "num_voxels": num_voxels,
    }


if __name__ == "__main__":
    # Small synthetic point cloud: batch=2, 200 points, features = (x,y,z,intensity).
    point_cloud_range = [0.0, 0.0, 0.0, 3.2, 3.2, 3.2]
    voxel_size = (0.2, 0.2, 0.4)          # grid = (16, 16, 8)

    key = jax.random.PRNGKey(0)
    k1, k2, k3 = jax.random.split(key, 3)
    N = 200
    xyz = jax.random.uniform(k1, (N, 3), minval=-0.5, maxval=3.7)   # some out of range
    inten = jax.random.uniform(k2, (N, 1))
    bidx = jax.random.randint(k3, (N, 1), 0, 2).astype(jnp.float32)
    points = jnp.concatenate([bidx, xyz, inten], axis=1)            # (200, 5)

    out = voxelize(points,
                   point_cloud_range=point_cloud_range,
                   voxel_size=voxel_size,
                   max_points_per_voxel=5,
                   max_total_voxels=512,
                   use_lead_xyz=True)
    jax.block_until_ready(out)

    assert out["voxels"].shape == (512, 5, 4)
    assert out["voxel_coords"].shape == (512, 4)
    assert out["voxel_num_points"].shape == (512,)
    assert int(out["num_voxels"]) > 0
    print("KERNEL_OK")
</pallas_src>

<mosaic_0001>
module attributes {stable_mosaic.version = 11 : i64} {
  func.func @_voxel_key_kernel(%arg0: i32, %arg1: memref<4x8x128xf32, #tpu.memory_space<vmem>>, %arg2: memref<8x128xi32, #tpu.memory_space<vmem>>) attributes {dimension_semantics = [#tpu.dimension_semantics<parallel>], iteration_bounds = array<i64: 1>, scalar_prefetch = 0 : i64, scratch_operands = 0 : i64, tpu.core_type = #tpu.core_type<tc>, window_params = [{transform_indices = @transform_0, window_bounds = array<i64: 4, 8, 128>}, {transform_indices = @transform_1, window_bounds = array<i64: 8, 128>}]} {
    %c0 = arith.constant 0 : index
    %c0_0 = arith.constant 0 : index
    %c0_1 = arith.constant 0 : index
    %0 = vector.load %arg1[%c0, %c0_0, %c0_1] : memref<4x8x128xf32, #tpu.memory_space<vmem>>, vector<1x8x128xf32>
    %1 = vector.shape_cast %0 : vector<1x8x128xf32> to vector<8x128xf32>
    %2 = arith.fptosi %1 : vector<8x128xf32> to vector<8x128xi32>
    %c1 = arith.constant 1 : index
    %c0_2 = arith.constant 0 : index
    %c0_3 = arith.constant 0 : index
    %3 = vector.load %arg1[%c1, %c0_2, %c0_3] : memref<4x8x128xf32, #tpu.memory_space<vmem>>, vector<1x8x128xf32>
    %4 = vector.shape_cast %3 : vector<1x8x128xf32> to vector<8x128xf32>
    %c2 = arith.constant 2 : index
    %c0_4 = arith.constant 0 : index
    %c0_5 = arith.constant 0 : index
    %5 = vector.load %arg1[%c2, %c0_4, %c0_5] : memref<4x8x128xf32, #tpu.memory_space<vmem>>, vector<1x8x128xf32>
    %6 = vector.shape_cast %5 : vector<1x8x128xf32> to vector<8x128xf32>
    %c3 = arith.constant 3 : index
    %c0_6 = arith.constant 0 : index
    %c0_7 = arith.constant 0 : index
    %7 = vector.load %arg1[%c3, %c0_6, %c0_7] : memref<4x8x128xf32, #tpu.memory_space<vmem>>, vector<1x8x128xf32>
    %8 = vector.shape_cast %7 : vector<1x8x128xf32> to vector<8x128xf32>
    %cst = arith.constant 0.000000e+00 : f32
    %9 = vector.broadcast %cst : f32 to vector<8x128xf32>
    %10 = arith.subf %4, %9 : vector<8x128xf32>
    %cst_8 = arith.constant 2.000000e-01 : f32
    %11 = vector.broadcast %cst_8 : f32 to vector<8x128xf32>
    %12 = arith.divf %10, %11 : vector<8x128xf32>
    %13 = math.floor %12 : vector<8x128xf32>
    %14 = arith.fptosi %13 : vector<8x128xf32> to vector<8x128xi32>
    %cst_9 = arith.constant 0.000000e+00 : f32
    %15 = vector.broadcast %cst_9 : f32 to vector<8x128xf32>
    %16 = arith.subf %6, %15 : vector<8x128xf32>
    %cst_10 = arith.constant 2.000000e-01 : f32
    %17 = vector.broadcast %cst_10 : f32 to vector<8x128xf32>
    %18 = arith.divf %16, %17 : vector<8x128xf32>
    %19 = math.floor %18 : vector<8x128xf32>
    %20 = arith.fptosi %19 : vector<8x128xf32> to vector<8x128xi32>
    %cst_11 = arith.constant 0.000000e+00 : f32
    %21 = vector.broadcast %cst_11 : f32 to vector<8x128xf32>
    %22 = arith.subf %8, %21 : vector<8x128xf32>
    %cst_12 = arith.constant 4.000000e-01 : f32
    %23 = vector.broadcast %cst_12 : f32 to vector<8x128xf32>
    %24 = arith.divf %22, %23 : vector<8x128xf32>
    %25 = math.floor %24 : vector<8x128xf32>
    %26 = arith.fptosi %25 : vector<8x128xf32> to vector<8x128xi32>
    %c0_i32 = arith.constant 0 : i32
    %27 = vector.broadcast %c0_i32 : i32 to vector<8x128xi32>
    %28 = arith.cmpi sge, %2, %27 : vector<8x128xi32>
    %c16_i32 = arith.constant 16 : i32
    %29 = vector.broadcast %c16_i32 : i32 to vector<8x128xi32>
    %30 = arith.cmpi slt, %2, %29 : vector<8x128xi32>
    %31 = arith.andi %28, %30 : vector<8x128xi1>
    %c0_i32_13 = arith.constant 0 : i32
    %32 = vector.broadcast %c0_i32_13 : i32 to vector<8x128xi32>
    %33 = arith.cmpi sge, %14, %32 : vector<8x128xi32>
    %34 = arith.andi %31, %33 : vector<8x128xi1>
    %c16_i32_14 = arith.constant 16 : i32
    %35 = vector.broadcast %c16_i32_14 : i32 to vector<8x128xi32>
    %36 = arith.cmpi slt, %14, %35 : vector<8x128xi32>
    %37 = arith.andi %34, %36 : vector<8x128xi1>
    %c0_i32_15 = arith.constant 0 : i32
    %38 = vector.broadcast %c0_i32_15 : i32 to vector<8x128xi32>
    %39 = arith.cmpi sge, %20, %38 : vector<8x128xi32>
    %40 = arith.andi %37, %39 : vector<8x128xi1>
    %c16_i32_16 = arith.constant 16 : i32
    %41 = vector.broadcast %c16_i32_16 : i32 to vector<8x128xi32>
    %42 = arith.cmpi slt, %20, %41 : vector<8x128xi32>
    %43 = arith.andi %40, %42 : vector<8x128xi1>
    %c0_i32_17 = arith.constant 0 : i32
    %44 = vector.broadcast %c0_i32_17 : i32 to vector<8x128xi32>
    %45 = arith.cmpi sge, %26, %44 : vector<8x128xi32>
    %46 = arith.andi %43, %45 : vector<8x128xi1>
    %c8_i32 = arith.constant 8 : i32
    %47 = vector.broadcast %c8_i32 : i32 to vector<8x128xi32>
    %48 = arith.cmpi slt, %26, %47 : vector<8x128xi32>
    %49 = arith.andi %46, %48 : vector<8x128xi1>
    %c8_i32_18 = arith.constant 8 : i32
    %50 = vector.broadcast %c8_i32_18 : i32 to vector<8x128xi32>
    %51 = arith.muli %2, %50 : vector<8x128xi32>
    %52 = arith.addi %51, %26 : vector<8x128xi32>
    %c16_i32_19 = arith.constant 16 : i32
    %53 = vector.broadcast %c16_i32_19 : i32 to vector<8x128xi32>
    %54 = arith.muli %52, %53 : vector<8x128xi32>
    %55 = arith.addi %54, %20 : vector<8x128xi32>
    %c16_i32_20 = arith.constant 16 : i32
    %56 = vector.broadcast %c16_i32_20 : i32 to vector<8x128xi32>
    %57 = arith.muli %55, %56 : vector<8x128xi32>
    %58 = arith.addi %57, %14 : vector<8x128xi32>
    %c2147483647_i32 = arith.constant 2147483647 : i32
    %59 = vector.broadcast %c2147483647_i32 : i32 to vector<8x128xi32>
    %60 = arith.select %49, %58, %59 : vector<8x128xi1>, vector<8x128xi32>
    %c0_21 = arith.constant 0 : index
    %c0_22 = arith.constant 0 : index
    %61 = vector.load %arg2[%c0_21, %c0_22] : memref<8x128xi32, #tpu.memory_space<vmem>>, vector<8x128xi32>
    tpu.vector_store %arg2[%c0_21, %c0_22], %60 {strides = array<i32>} : memref<8x128xi32, #tpu.memory_space<vmem>>, vector<8x128xi32>,
    return
  }
  func.func @transform_0(%arg0: i32) -> (i32, i32, i32) {
    %c0_i32 = arith.constant 0 : i32
    %c0_i32_0 = arith.constant 0 : i32
    %c0_i32_1 = arith.constant 0 : i32
    return %c0_i32, %arg0, %c0_i32_0 : i32, i32, i32
  }
  func.func @transform_1(%arg0: i32) -> (i32, i32) {
    %c0_i32 = arith.constant 0 : i32
    %c0_i32_0 = arith.constant 0 : i32
    return %arg0, %c0_i32 : i32, i32
  }
}

</mosaic_0001>

<bundles_post_ra>
// kernel: tpu_custom_call.1
= control target key start
LH: loop header
LB: loop body
LE: loop exit
PB: predicated region body
PF: predicated region fallthrough
CT: control target
= control target key end

     0   :  { %6 = vsyncpa [#allocation3], 0  ;;  %s156_s0 = inlined_call_operand.hbm [shape: f32[4,8,128], index: 0, kind: input, shape index: {}]   ;;  %s157_s1 = inlined_call_operand.hbm [shape: s32[8,128], index: 1, kind: output, shape index: {}]  }
   0x1   :  { %7 = vsyncpa [#allocation4], 0  ;;  %s136_s6 = smov [#allocation2]  }
   0x2   :  { %s13_s7 = sshll.u32 %s136_s6, 4  ;;  %s14_s7 = int_to_ptr.vmem [resolvable:$true] %s13_s7 }
   0x3   :  { %s100_s8 = scalar_lea.vmem %s14_s7, 512  ;;  %p105_p1 = scmp.lt.s32.totalorder %s14_s7, %s14_s7 }
   0x4   :  { %p101_p0 = scmp.ne.s32.totalorder %s14_s7, %s100_s8  ;;  %p106_p2 = scmp.lt.s32.totalorder %s100_s8, %s100_s8 }
   0x6   :  { %p107_p3 = por %p106_p2, %p105_p1 }
   0x8   :  { %p108_p4 = pnand %p107_p3, %p101_p0 }
   0xa   :  { %111 = shalt.err (!%p108_p4)
}
   0xb   :  { %s137_s9 = smov 128   ;;  %s138_s10 = smov 8  }
   0xc   :  { %19 = dma.hbm_to_vmem [thread:$0]  %s156_s0, 512, %s14_s7, [#allocation3], %s137_s9, %s137_s9, %s138_s10  }
   0xd   :  { %132 = dma.done.wait [#allocation3], 512  }
   0xe   :  { %133 = vsyncadd [#allocation3], 4294966784  ;;  %v23_v0 = vld [vmem:[#allocation2] sm:$0xff]  ;;  %v26_v1 = vld [vmem:[#allocation2 + $0x8] sm:$0xff]  ;;  %s139_s0 = smov [#allocation5]  }
   0xf   :  { %v28_v2 = vld [vmem:[#allocation2 + $0x10] sm:$0xff]  ;;  %v80_v3 = vtrunc.f32 %v23_v0  ;;  %v30_v4 = vld [vmem:[#allocation2 + $0x18] sm:$0xff]  ;;  %v32_v5 = vmul.f32 5.0, %v26_v1  ;;  %s71_s13 = sshll.u32 %s139_s0, 4  ;;  %s72_s13 = int_to_ptr.vmem [resolvable:$true] %s71_s13 }
  0x10   :  { %v35_v6 = vmul.f32 5.0, %v28_v2  ;;  %v39_v7 = vmul.f32 2.5, %v30_v4  ;;  %s112_s14 = scalar_lea.vmem %s72_s13, 128  ;;  %p117_p6 = scmp.lt.s32.totalorder %s72_s13, %s72_s13 }
  0x11   :  { %v81_v8 = vcvt.f32.s32 %v80_v3  ;;  %v33_v9 = vfloor.f32 %v32_v5  ;;  %p113_p5 = scmp.ne.s32.totalorder %s72_s13, %s112_s14  ;;  %p118_p7 = scmp.lt.s32.totalorder %s112_s14, %s112_s14 }
  0x12   :  { %v36_v10 = vfloor.f32 %v35_v6  ;;  %v40_v11 = vfloor.f32 %v39_v7 }
  0x13   :  { %v82_v12 = vtrunc.f32 %v33_v9  ;;  %vm42_vm0 = vcmp.ge.s32.totalorder %v81_v8, 0  ;;  %vm43_vm1 = vcmp.lt.s32.totalorder %v81_v8, 16  ;;  %v57_v15 = vmul.u32 8, %v81_v8  ;;  %p119_p8 = por %p118_p7, %p117_p6 }
  0x14   :  { %v84_v13 = vtrunc.f32 %v36_v10  ;;  %v86_v14 = vtrunc.f32 %v40_v11  ;;  %vm44_vm2 = vmand %vm42_vm0, %vm43_vm1 }
  0x15   :  { %v83_v16 = vcvt.f32.s32 %v82_v12  ;;  %p120_p9 = pnand %p119_p8, %p113_p5 }
  0x16   :  { %v85_v17 = vcvt.f32.s32 %v84_v13  ;;  %v87_v18 = vcvt.f32.s32 %v86_v14 }
  0x17   :  { %vm45_vm3 = vcmp.ge.s32.totalorder %v83_v16, 0  ;;  %vm47_vm4 = vcmp.lt.s32.totalorder %v83_v16, 16 }
  0x18   :  { %vm49_vm5 = vcmp.ge.s32.totalorder %v85_v17, 0  ;;  %vm46_vm6 = vmand %vm44_vm2, %vm45_vm3  ;;  %vm51_vm7 = vcmp.lt.s32.totalorder %v85_v17, 16  ;;  %v58_v19 = vadd.s32 %v87_v18, %v57_v15  ;;  %vm53_vm9 = vcmp.ge.s32.totalorder %v87_v18, 0 }
  0x19   :  { %vm48_vm8 = vmand %vm46_vm6, %vm47_vm4  ;;  %vm55_vm13 = vcmp.lt.s32.totalorder %v87_v18, 8 }
  0x1a   :  { %vm50_vm10 = vmand %vm48_vm8, %vm49_vm5  ;;  %v59_v20 = vmul.u32 16, %v58_v19 }
  0x1b   :  { %vm52_vm11 = vmand %vm50_vm10, %vm51_vm7 }
  0x1c   :  { %vm54_vm12 = vmand %vm52_vm11, %vm53_vm9  ;;  %v60_v21 = vadd.s32 %v85_v17, %v59_v20 }
  0x1d   :  { %vm56_vm14 = vmand %vm54_vm12, %vm55_vm13 }
  0x1e   :  { %v61_v22 = vmul.u32 16, %v60_v21 }
  0x20   :  { %v62_v23 = vadd.s32 %v83_v16, %v61_v22 }
  0x22   :  { %v63_v24 = vsel %vm56_vm14, %v62_v23, 2147483647 }
  0x23   :  { %64 = vst [vmem:[#allocation5] sm:$0xff] %v63_v24 }
  0x24   :  { %123 = shalt.err (!%p120_p9)
}
  0x25   :  { %74 = dma.vmem_to_hbm [thread:$0]  %s72_s13, 128, %s157_s1, [#allocation4]  }
  0x26   :  { %134 = dma.done.wait [#allocation4], 128  }
  0x27   :  { %135 = vsyncadd [#allocation4], 4294967168 }
  0x28   :  { %78 = vsyncpa [#allocation3], 1 }
  0x29   :  { %79 = vsyncpa [#allocation4], 1 }

</bundles_post_ra>
